<compile_context>
chip_gen: v5e
topology: v5e:2x2
jax: 0.10.0
libtpu: 0.0.40
codegen_flags: <defaults>
</compile_context>

<pallas_src>
import functools

import jax
import jax.numpy as jnp
from jax.experimental import pallas as pl
from jax.experimental.pallas import tpu as pltpu

_LANE = 128
_SUBLANE = 8
# (2048, 128) f32 block = 1 MiB per buffer; worst case (explicit-spike step) is
# 5 operands x 2 pipeline buffers ~= 10 MiB < v5e's 16 MiB default scoped VMEM.
_MAX_ROW_TILE = 2048


def _cdiv(a, b):
    return (a + b - 1) // b


def _round_up(a, b):
    return _cdiv(a, b) * b


def _choose_tiling(n_elems):
    """Return (row_tile, rows_padded) for a flattened tensor of n_elems f32 values."""
    rows = _cdiv(max(int(n_elems), 1), _LANE)
    if rows <= _SUBLANE:
        # Tiny tensor: a single minimal (8,128) tile.
        return _SUBLANE, _SUBLANE
    if rows <= 2 * _MAX_ROW_TILE:
        # Split into (at least) two grid steps: keeps both v7x TensorCores busy and
        # lets the software pipeline overlap writeback of step i with fetch of i+1.
        row_tile = _round_up(_cdiv(rows, 2), _SUBLANE)
        return row_tile, 2 * row_tile
    return _MAX_ROW_TILE, _round_up(rows, _MAX_ROW_TILE)


def _pad_to_2d(a, rows_padded):
    """Flatten `a` and pad to a lane-dense (rows_padded, 128) slab."""
    n = a.size
    padded_n = rows_padded * _LANE
    flat = a.reshape(-1)
    if padded_n != n:
        flat = jnp.pad(flat, (0, padded_n - n))
    return flat.reshape(rows_padded, _LANE)


def _from_padded_2d(a2d, shape, n):
    flat = a2d.reshape(-1)
    if flat.shape[0] != n:
        flat = flat[:n]
    return flat.reshape(shape)


# ---------------------------------------------------------------------------
# Kernels
# ---------------------------------------------------------------------------

def _lif_kernel_recompute(x_ref, v_ref, spikes_out_ref, v_out_ref, *,
                          threshold, decay, hard_reset):
    """One LIF step; spikes_prev recomputed in-register from v_prev.

    Valid only when the stored spike state equals (v_prev - threshold > 0); the LIF
    wrapper tracks that invariant with an explicit flag.  Saves one HBM read stream.
    """
    x = x_ref[...]
    v_prev = v_ref[...]
    s_prev = (v_prev - threshold > 0.0).astype(x.dtype)
    if hard_reset:
        v_new = v_prev * (1.0 - s_prev) * decay + x
    else:
        v_new = (v_prev - s_prev * threshold) * decay + x
    v_out_ref[...] = v_new
    s_new = (v_new - threshold > 0.0).astype(x.dtype)
    spikes_out_ref[...] = s_new.astype(spikes_out_ref.dtype)


def _lif_kernel_explicit(x_ref, v_ref, s_ref, spikes_out_ref, v_out_ref, *,
                         threshold, decay, hard_reset):
    """One LIF step with the previous spike state loaded from HBM."""
    x = x_ref[...]
    v_prev = v_ref[...]
    s_prev = s_ref[...].astype(x.dtype)
    if hard_reset:
        v_new = v_prev * (1.0 - s_prev) * decay + x
    else:
        v_new = (v_prev - s_prev * threshold) * decay + x
    v_out_ref[...] = v_new
    s_new = (v_new - threshold > 0.0).astype(x.dtype)
    spikes_out_ref[...] = s_new.astype(spikes_out_ref.dtype)


def _lif_seq_kernel(x_ref, spikes_ref, v_final_ref, v_sc, s_sc, *,
                    threshold, decay, hard_reset):
    """Time-fused LIF: v and spikes stay resident in VMEM scratch across the t axis."""
    t = pl.program_id(1)

    @pl.when(t == 0)
    def _():
        v_sc[...] = jnp.zeros_like(v_sc)
        s_sc[...] = jnp.zeros_like(s_sc)

    x = x_ref[0].astype(v_sc.dtype)
    v_prev = v_sc[...]
    s_prev = s_sc[...]
    if hard_reset:
        v_new = v_prev * (1.0 - s_prev) * decay + x
    else:
        v_new = (v_prev - s_prev * threshold) * decay + x
    s_new = (v_new - threshold > 0.0).astype(v_sc.dtype)
    v_sc[...] = v_new
    s_sc[...] = s_new
    spikes_ref[0] = s_new.astype(spikes_ref.dtype)

    @pl.when(t == pl.num_programs(1) - 1)
    def _():
        v_final_ref[...] = v_new.astype(v_final_ref.dtype)


# ---------------------------------------------------------------------------
# Jitted per-step entry points (state kept in padded 2-D layout, donated)
# ---------------------------------------------------------------------------

def _step_impl(x, v2d, s2d, threshold, decay, hard_reset, spike_dtype):
    n = x.size
    row_tile, rows_padded = _choose_tiling(n)
    x2d = _pad_to_2d(x, rows_padded)
    blk = pl.BlockSpec((row_tile, _LANE), lambda i: (i, 0))
    grid = (rows_padded // row_tile,)
    sdt = jnp.dtype(spike_dtype)
    out_shape = (jax.ShapeDtypeStruct((rows_padded, _LANE), sdt),
                 jax.ShapeDtypeStruct((rows_padded, _LANE), x.dtype))
    static = dict(threshold=float(threshold), decay=float(decay),
                  hard_reset=bool(hard_reset))
    padded_n = rows_padded * _LANE
    if s2d is None:
        kernel = functools.partial(_lif_kernel_recompute, **static)
        operands = (x2d, v2d)
        in_specs = [blk, blk]
        aliases = {1: 1}                       # v_prev buffer reused for v_new
        nbytes = padded_n * (3 * x.dtype.itemsize + sdt.itemsize)
    else:
        kernel = functools.partial(_lif_kernel_explicit, **static)
        operands = (x2d, v2d, s2d)
        in_specs = [blk, blk, blk]
        aliases = {1: 1, 2: 0}                 # v_prev -> v_new, spikes_prev -> spikes_new
        nbytes = padded_n * (3 * x.dtype.itemsize + 2 * sdt.itemsize)
    return pl.pallas_call(
        kernel,
        out_shape=out_shape,
        grid=grid,
        in_specs=in_specs,
        out_specs=(blk, blk),
        input_output_aliases=aliases,
        compiler_params=pltpu.CompilerParams(dimension_semantics=("parallel",)),
        cost_estimate=pl.CostEstimate(flops=6 * padded_n, transcendentals=0,
                                      bytes_accessed=nbytes),
    )(*operands)


@functools.partial(jax.jit,
                   static_argnames=("threshold", "decay", "hard_reset", "spike_dtype"),
                   donate_argnums=(1,))
def _lif_step_recompute(x, v2d, *, threshold, decay, hard_reset, spike_dtype):
    return _step_impl(x, v2d, None, threshold, decay, hard_reset, spike_dtype)


@functools.partial(jax.jit,
                   static_argnames=("threshold", "decay", "hard_reset", "spike_dtype"),
                   donate_argnums=(1, 2))
def _lif_step_explicit(x, v2d, s2d, *, threshold, decay, hard_reset, spike_dtype):
    return _step_impl(x, v2d, s2d, threshold, decay, hard_reset, spike_dtype)


# ---------------------------------------------------------------------------
# Time-fused sequence entry point (fresh zero state, v held in VMEM across T)
# ---------------------------------------------------------------------------

@functools.partial(jax.jit, static_argnames=("threshold", "decay", "hard_reset"))
def lif_forward_sequence(x_seq, *, threshold=1.0, decay=1.0, hard_reset=True):
    """Run T LIF steps from a fresh (zero) state. x_seq: (T, ...). Returns
    (spikes_seq shaped like x_seq, v_final shaped like x_seq[0])."""
    T = x_seq.shape[0]
    feat_shape = x_seq.shape[1:]
    n = 1
    for d in feat_shape:
        n *= int(d)
    row_tile, rows_padded = _choose_tiling(n)
    padded_n = rows_padded * _LANE

    xf = x_seq.reshape(T, n)
    if padded_n != n:
        xf = jnp.pad(xf, ((0, 0), (0, padded_n - n)))
    x3d = xf.reshape(T, rows_padded, _LANE)

    grid = (rows_padded // row_tile, T)
    kernel = functools.partial(_lif_seq_kernel, threshold=float(threshold),
                               decay=float(decay), hard_reset=bool(hard_reset))
    xt_spec = pl.BlockSpec((1, row_tile, _LANE), lambda i, t: (t, i, 0))
    vf_spec = pl.BlockSpec((row_tile, _LANE), lambda i, t: (i, 0))

    spikes3d, vfin2d = pl.pallas_call(
        kernel,
        out_shape=(jax.ShapeDtypeStruct((T, rows_padded, _LANE), x_seq.dtype),
                   jax.ShapeDtypeStruct((rows_padded, _LANE), x_seq.dtype)),
        grid=grid,
        in_specs=[xt_spec],
        out_specs=(xt_spec, vf_spec),
        scratch_shapes=[pltpu.VMEM((row_tile, _LANE), jnp.float32),
                        pltpu.VMEM((row_tile, _LANE), jnp.float32)],
        compiler_params=pltpu.CompilerParams(
            dimension_semantics=("parallel", "arbitrary")),
        cost_estimate=pl.CostEstimate(
            flops=6 * T * padded_n, transcendentals=0,
            bytes_accessed=(2 * T + 1) * padded_n * x_seq.dtype.itemsize),
    )(x3d)

    spikes_flat = spikes3d.reshape(T, padded_n)
    vfin_flat = vfin2d.reshape(padded_n)
    if padded_n != n:
        spikes_flat = spikes_flat[:, :n]
        vfin_flat = vfin_flat[:n]
    return spikes_flat.reshape(x_seq.shape), vfin_flat.reshape(feat_shape)


# ---------------------------------------------------------------------------
# Stateful wrapper mirroring the PyTorch LIF module's forward pass
# ---------------------------------------------------------------------------

class LIF:
    """Forward-only LIF neuron. State is held in a padded lane-dense 2-D layout and
    updated in place (donated + aliased) every step; v / spikes are exposed as
    read-only properties in the user-facing shape."""

    def __init__(self, threshold=1.0, decay=1.0, hardReset=True, islast=False,
                 vmax=1.0, spike_dtype=None):
        self.threshold = float(threshold)
        self.decay = float(decay)
        self.hardReset = bool(hardReset)
        self.islast = islast      # only affects backward in PyTorch; forward-only here
        self.vmax = vmax          # only affects backward in PyTorch; forward-only here
        self.spike_dtype = spike_dtype   # optional narrow dtype for the spike stream
        self._v2d = None
        self._s2d = None
        self._shape = None
        self._n = 0
        # True iff the stored spike state provably equals (v - threshold > 0); this
        # (not the sign of threshold) gates the recompute fast path.
        self._spikes_consistent = False

    def __call__(self, x):
        if self._v2d is None:
            self._shape = x.shape
            self._n = int(x.size)
            _, rows_padded = _choose_tiling(self._n)
            sdt = jnp.dtype(self.spike_dtype) if self.spike_dtype is not None else x.dtype
            self._v2d = jnp.zeros((rows_padded, _LANE), x.dtype)
            self._s2d = jnp.zeros((rows_padded, _LANE), sdt)
            # Zero state: spikes == (v - threshold > 0) only when threshold >= 0.
            self._spikes_consistent = self.threshold >= 0.0
        elif x.shape != self._shape:
            raise ValueError(f"LIF state was built for shape {self._shape}, got {x.shape}; "
                             "call reset() first.")

        sdt = self._s2d.dtype
        if self._spikes_consistent:
            spikes2d, v2d = _lif_step_recompute(
                x, self._v2d, threshold=self.threshold, decay=self.decay,
                hard_reset=self.hardReset, spike_dtype=sdt)
        else:
            spikes2d, v2d = _lif_step_explicit(
                x, self._v2d, self._s2d, threshold=self.threshold, decay=self.decay,
                hard_reset=self.hardReset, spike_dtype=sdt)
        self._v2d, self._s2d = v2d, spikes2d
        self._spikes_consistent = True   # kernel output satisfies s == (v - thr > 0)
        return _from_padded_2d(spikes2d, self._shape, self._n)

    def forward_sequence(self, x_seq):
        """Process a whole (T, ...) sequence from a fresh state with the time-fused
        kernel (v never round-trips through HBM between steps)."""
        self.reset()
        spikes_seq, v_final = lif_forward_sequence(
            x_seq, threshold=self.threshold, decay=self.decay,
            hard_reset=self.hardReset)
        self._shape = x_seq.shape[1:]
        self._n = int(v_final.size)
        _, rows_padded = _choose_tiling(self._n)
        sdt = jnp.dtype(self.spike_dtype) if self.spike_dtype is not None else x_seq.dtype
        self._v2d = _pad_to_2d(v_final, rows_padded)
        self._s2d = _pad_to_2d(spikes_seq[-1].astype(sdt), rows_padded)
        self._spikes_consistent = True
        return spikes_seq

    @property
    def v(self):
        if self._v2d is None:
            return None
        return _from_padded_2d(self._v2d, self._shape, self._n)

    @property
    def spikes(self):
        if self._s2d is None:
            return None
        return _from_padded_2d(self._s2d, self._shape, self._n)

    def reset(self):
        self._v2d = None
        self._s2d = None
        self._shape = None
        self._n = 0
        self._spikes_consistent = False


if __name__ == "__main__":
    key = jax.random.PRNGKey(0)
    k1, k2, k3, k4 = jax.random.split(key, 4)

    # --- 1) hard reset, threshold >= 0 (recompute fast path), tile-aligned shape
    N, C, H, W = 2, 4, 16, 16
    x_t0 = jax.random.normal(k1, (N, C, H, W), dtype=jnp.float32) * 2.0
    x_t1 = jax.random.normal(k2, (N, C, H, W), dtype=jnp.float32) * 2.0

    lif = LIF(threshold=1.0, decay=0.9, hardReset=True)
    s0 = lif(x_t0)
    s1 = lif(x_t1)
    jax.block_until_ready(s1)

    v_ref = jnp.zeros_like(x_t0)
    s_ref = jnp.zeros_like(x_t0)
    for xt in (x_t0, x_t1):
        v_ref = v_ref * (1.0 - s_ref) * 0.9 + xt
        s_ref = (v_ref - 1.0 > 0.0).astype(jnp.float32)

    assert s1.shape == (N, C, H, W) and s1.dtype == jnp.float32
    assert jnp.array_equal(s1, s_ref), "hard-reset spike mismatch vs reference"
    assert jnp.allclose(lif.v, v_ref, atol=1e-6), "hard-reset membrane mismatch"

    # --- 2) soft reset, negative threshold (explicit-spike first step), odd shape (padding)
    xo = jax.random.normal(k3, (2, 3, 5, 7), dtype=jnp.float32)
    lif2 = LIF(threshold=-0.5, decay=0.8, hardReset=False)
    so0 = lif2(xo)
    so1 = lif2(xo * 0.5)
    jax.block_until_ready(so1)

    v_r = jnp.zeros_like(xo)
    s_r = jnp.zeros_like(xo)
    for xt in (xo, xo * 0.5):
        v_r = (v_r - s_r * (-0.5)) * 0.8 + xt
        s_r = (v_r - (-0.5) > 0.0).astype(jnp.float32)

    assert jnp.array_equal(so1, s_r), "soft-reset spike mismatch vs reference"
    assert jnp.allclose(lif2.v, v_r, atol=1e-6), "soft-reset membrane mismatch"

    # --- 3) time-fused sequence kernel vs per-step reference
    T = 8
    x_seq = jax.random.normal(k4, (T, N, C, H, W), dtype=jnp.float32)
    spikes_seq, v_final = lif_forward_sequence(x_seq, threshold=1.0, decay=0.9,
                                               hard_reset=True)
    jax.block_until_ready(spikes_seq)

    v_rs = jnp.zeros((N, C, H, W), jnp.float32)
    s_rs = jnp.zeros((N, C, H, W), jnp.float32)
    ref_spikes = []
    for t in range(T):
        v_rs = v_rs * (1.0 - s_rs) * 0.9 + x_seq[t]
        s_rs = (v_rs - 1.0 > 0.0).astype(jnp.float32)
        ref_spikes.append(s_rs)
    ref_spikes = jnp.stack(ref_spikes)

    assert jnp.array_equal(spikes_seq, ref_spikes), "fused-sequence spike mismatch"
    assert jnp.allclose(v_final, v_rs, atol=1e-5), "fused-sequence membrane mismatch"

    # --- 4) optional narrow spike dtype (bf16 is lossless for {0,1} spikes)
    lif3 = LIF(threshold=1.0, decay=0.9, hardReset=True, spike_dtype=jnp.bfloat16)
    sb = lif3(x_t0)
    jax.block_until_ready(sb)
    assert sb.dtype == jnp.bfloat16
    assert jnp.array_equal(sb.astype(jnp.float32), s0), "bf16 spike mismatch"

    print("KERNEL_OK")
</pallas_src>

<mosaic_0001>
module attributes {stable_mosaic.version = 11 : i64} {
  func.func @_lif_kernel_recompute(%arg0: i32, %arg1: memref<8x128xf32, #tpu.memory_space<vmem>>, %arg2: memref<8x128xf32, #tpu.memory_space<vmem>>, %arg3: memref<8x128xf32, #tpu.memory_space<vmem>>, %arg4: memref<8x128xf32, #tpu.memory_space<vmem>>) attributes {dimension_semantics = [#tpu.dimension_semantics<parallel>], iteration_bounds = array<i64: 2>, scalar_prefetch = 0 : i64, scratch_operands = 0 : i64, tpu.core_type = #tpu.core_type<tc>, window_params = [{transform_indices = @transform_0, window_bounds = array<i64: 8, 128>}, {transform_indices = @transform_1, window_bounds = array<i64: 8, 128>}, {transform_indices = @transform_2, window_bounds = array<i64: 8, 128>}, {transform_indices = @transform_3, window_bounds = array<i64: 8, 128>}]} {
    %c0 = arith.constant 0 : index
    %c0_0 = arith.constant 0 : index
    %0 = vector.load %arg1[%c0, %c0_0] : memref<8x128xf32, #tpu.memory_space<vmem>>, vector<8x128xf32>
    %c0_1 = arith.constant 0 : index
    %c0_2 = arith.constant 0 : index
    %1 = vector.load %arg2[%c0_1, %c0_2] : memref<8x128xf32, #tpu.memory_space<vmem>>, vector<8x128xf32>
    %cst = arith.constant 1.000000e+00 : f32
    %2 = vector.broadcast %cst : f32 to vector<8x128xf32>
    %3 = arith.subf %1, %2 : vector<8x128xf32>
    %cst_3 = arith.constant 0.000000e+00 : f32
    %4 = vector.broadcast %cst_3 : f32 to vector<8x128xf32>
    %5 = arith.cmpf ogt, %3, %4 : vector<8x128xf32>
    %6 = arith.extui %5 : vector<8x128xi1> to vector<8x128xi32>
    %7 = arith.sitofp %6 : vector<8x128xi32> to vector<8x128xf32>
    %cst_4 = arith.constant 1.000000e+00 : f32
    %8 = vector.broadcast %cst_4 : f32 to vector<8x128xf32>
    %9 = arith.subf %8, %7 : vector<8x128xf32>
    %10 = arith.mulf %1, %9 : vector<8x128xf32>
    %cst_5 = arith.constant 0.899999976 : f32
    %11 = vector.broadcast %cst_5 : f32 to vector<8x128xf32>
    %12 = arith.mulf %10, %11 : vector<8x128xf32>
    %13 = arith.addf %12, %0 : vector<8x128xf32>
    %c0_6 = arith.constant 0 : index
    %c0_7 = arith.constant 0 : index
    %14 = vector.load %arg4[%c0_6, %c0_7] : memref<8x128xf32, #tpu.memory_space<vmem>>, vector<8x128xf32>
    tpu.vector_store %arg4[%c0_6, %c0_7], %13 {strides = array<i32>} : memref<8x128xf32, #tpu.memory_space<vmem>>, vector<8x128xf32>,
    %cst_8 = arith.constant 1.000000e+00 : f32
    %15 = vector.broadcast %cst_8 : f32 to vector<8x128xf32>
    %16 = arith.subf %13, %15 : vector<8x128xf32>
    %cst_9 = arith.constant 0.000000e+00 : f32
    %17 = vector.broadcast %cst_9 : f32 to vector<8x128xf32>
    %18 = arith.cmpf ogt, %16, %17 : vector<8x128xf32>
    %19 = arith.extui %18 : vector<8x128xi1> to vector<8x128xi32>
    %20 = arith.sitofp %19 : vector<8x128xi32> to vector<8x128xf32>
    %c0_10 = arith.constant 0 : index
    %c0_11 = arith.constant 0 : index
    %21 = vector.load %arg3[%c0_10, %c0_11] : memref<8x128xf32, #tpu.memory_space<vmem>>, vector<8x128xf32>
    tpu.vector_store %arg3[%c0_10, %c0_11], %20 {strides = array<i32>} : memref<8x128xf32, #tpu.memory_space<vmem>>, vector<8x128xf32>,
    return
  }
  func.func @transform_0(%arg0: i32) -> (i32, i32) {
    %c0_i32 = arith.constant 0 : i32
    %c0_i32_0 = arith.constant 0 : i32
    return %arg0, %c0_i32 : i32, i32
  }
  func.func @transform_1(%arg0: i32) -> (i32, i32) {
    %c0_i32 = arith.constant 0 : i32
    %c0_i32_0 = arith.constant 0 : i32
    return %arg0, %c0_i32 : i32, i32
  }
  func.func @transform_2(%arg0: i32) -> (i32, i32) {
    %c0_i32 = arith.constant 0 : i32
    %c0_i32_0 = arith.constant 0 : i32
    return %arg0, %c0_i32 : i32, i32
  }
  func.func @transform_3(%arg0: i32) -> (i32, i32) {
    %c0_i32 = arith.constant 0 : i32
    %c0_i32_0 = arith.constant 0 : i32
    return %arg0, %c0_i32 : i32, i32
  }
}

</mosaic_0001>

<bundles_post_ra>
// kernel: _lif_step_recompute.1
= control target key start
LH: loop header
LB: loop body
LE: loop exit
PB: predicated region body
PF: predicated region fallthrough
CT: control target
= control target key end

     0   :  { %9 = vsyncpa [#allocation3], 0  ;;  %s560_s0 = inlined_call_operand.vmem [shape: f32[16,128], index: 0, kind: input, shape index: {}]   ;;  %s561_s1 = inlined_call_operand.vmem [shape: f32[16,128], index: 1, kind: input, shape index: {}, may-alias: {1,3}]   ;;  %s562_s2 = inlined_call_operand.hbm [shape: f32[16,128], index: 2, kind: output, shape index: {0}]   ;;  %s563_s3 = inlined_call_operand.vmem [shape: f32[16,128], index: 3, kind: output, shape index: {1}, may-alias: {1,3}]  }
   0x1   :  { %11 = vsyncpa [#allocation3 + $0x1], 0  ;;  %s469_s12 = smov 0   ;;  %s471_s13 = smov 0  }
   0x2   :  { %s473_s14 = smov 0   ;;  %s475_s15 = smov 0  }
   0x3 LB: > { %s490_s16 = sadd.s32 4294967295, %s446_s15   ;;  %s328_s17 = sadd.s32 4294967294, %s446_s15   ;;  %s446_s15 = sphi %s475_s15, %s569_s15   ;;  %s442_s14 = sphi %s473_s14, %s568_s14   ;;  %s438_s13 = sphi %s471_s13, %s567_s13   ;;  %s434_s12 = sphi %s469_s12, %s566_s12  }
   0x4   : > { %s494_s18 = sadd.s32 1, %s446_s15   ;;  %s76_s19 = sadd.s32 1, %s442_s14 }
   0x5   : > { %s73_s20 = ssub.s32 %s446_s15, %s494_s18  ;;  %p86_p0 = scmp.ne.s32.totalorder %s442_s14, %s438_s13 }
   0x6   : > { %p74_p1 = scmp.eq.s32.totalorder %s73_s20, 0  ;;  %p87_p2 = scmp.eq.s32.totalorder %s490_s16, 1 }
   0x7   : > { %p92_p3 = scmp.ne.s32.totalorder %s438_s13, %s434_s12  ;;  %p93_p4 = scmp.eq.s32.totalorder %s328_s17, 1 }
   0x8   : > { %s505_s21 = scalar_select %p74_p1, %s442_s14, %s76_s19  }
   0x9   : > { %p507_p5 = por %p87_p2, %p86_p0  ;;  %p511_p6 = por %p93_p4, %p92_p3 }
   0xa   : > { %p331_p7 = scmp.ge.s32.totalorder %s446_s15, 1  ;;  %p151_p8 = scmp.lt.s32.totalorder %s446_s15, 3 }
   0xc   : > { %p152_p9 = pnand %p331_p7, %p151_p8 }
   0xd   : > { %p182_p10 = scmp.lt.s32.totalorder (!%p152_p9), %s490_s16, 1  ;;  %s173_s29 = sand.u32 (!%p152_p9), 1, %s438_s13  }
   0xe   : > { %155 = sbr.rel (%p152_p9) target bundleno = 43 (0x2b), region = 28  ;;  %s332_s6 = sshll.u32 (!%p152_p9), %s173_s29, 3 }
   0xf   : > { %s341_s7 = sshll.u32 (!%p152_p9), %s490_s16, 3  ;;  %s175_s20 = scalar_lea.vmem (!%p152_p9), [#allocation2], %s332_s6 }
  0x10   : > { %s225_s10 = scalar_lea.hbm (!%p152_p9), %s562_s2, %s341_s7  ;;  %s404_s4 = scalar_lea.hbm (!%p152_p9), %s562_s2, 16 }
  0x11   : > { %s229_s26 = sshll.u32 (!%p152_p9), %s225_s10, 4  ;;  %s230_s26 = int_to_ptr.hbm [resolvable:$true] %s229_s26 }
  0x12   : > { %s398_s27 = sshra.s32 (!%p152_p9), %s230_s26, 4  ;;  %s399_s27 = int_to_ptr.hbm [resolvable:$true] %s398_s27 }
  0x13   : > { %s183_s24 = scalar_select %p182_p10, %s490_s16, 1  ;;  %v448_v2 = vmov 0.0  }
  0x14   : > { %s211_s16 = scalar_lea.sflag [#allocation3], %s173_s29  ;;  %p405_p0 = scmp.lt.s32.totalorder %s399_s27, %s562_s2 }
  0x15   : > { %s333_s25 = sshll.u32 %s183_s24, 3  ;;  %s227_s24 = sshll.u32 %s175_s20, 4  ;;  %s228_s24 = int_to_ptr.vmem [resolvable:$true] %s227_s24 }
  0x16   : > { %s189_s28 = scalar_lea.vmem %s561_s1, %s333_s25  ;;  %s185_s5 = scalar_lea.vmem %s560_s0, %s333_s25 }
  0x17   : > { %v195_v0 = vld [vmem:[%s189_s28] sm:$0xff]  ;;  %s193_s19 = scalar_lea.vmem %s563_s3, %s333_s25  ;;  %s400_s28 = scalar_lea.hbm %s399_s27, 8 }
  0x18   : > { %v336_v1 = vadd.f32 -1.0, %v195_v0  ;;  %v194_v6 = vld [vmem:[%s185_s5] sm:$0xff]  ;;  %p401_p11 = scmp.ne.s32.totalorder %s399_s27, %s400_s28  ;;  %p406_p1 = scmp.lt.s32.totalorder %s404_s4, %s400_s28 }
  0x1a   : > { %vm197_vm0 = vcmp.gt.f32.partialorder %v336_v1, 0.0  ;;  %p402_p12 = pnand %p401_p11, %p507_p5  ;;  %p407_p2 = por %p406_p1, %p405_p0 }
  0x1b   : > { %v337_v3 = vsel %vm197_vm0, 1.0, %v448_v2 }
  0x1c   : > { %v200_v4 = vsub.f32 1.0, %v337_v3  ;;  %p403_p13 = pneg %p402_p12 }
  0x1e   : > { %v201_v5 = vmul.f32 %v200_v4, %v195_v0  ;;  %p408_p3 = pnand %p407_p2, %p403_p13 }
  0x20   : > { %v202_v7 = vmul.f32 0.9, %v201_v5 }
  0x22   : > { %v203_v8 = vadd.f32 %v202_v7, %v194_v6 }
  0x24   : > { %v338_v9 = vadd.f32 -1.0, %v203_v8  ;;  %204 = vst [vmem:[%s193_s19] sm:$0xff] %v203_v8 }
  0x26   : > { %vm206_vm1 = vcmp.gt.f32.partialorder %v338_v9, 0.0 }
  0x27   : > { %v339_v10 = vsel %vm206_vm1, 1.0, %v448_v2 }
  0x28   : > { %209 = vst [vmem:[%s175_s20] sm:$0xff] %v339_v10 }
  0x29   : > { %411 = shalt.err (!%p408_p3)
}
  0x2a   : > { %344 = dma.vmem_to_hbm [thread:$0]  (%p507_p5), %s228_s24, 128, %s230_s26, %s211_s16  }
  0x2b PF: > { %p350_p4 = scmp.ge.s32.totalorder %s446_s15, 2  ;;  %s244_s29 = sand.u32 1, %s434_s12  }
  0x2c   : > { %s245_s7 = scalar_lea.sflag [#allocation3], %s244_s29 }
  0x2d   : > { %p347_p7 = pnand %p350_p4, %p511_p6 }
  0x2f   : > { %p348_p8 = pneg %p347_p7 }
  0x31   : > { %429 = dma.done.wait (%p348_p8), %s245_s7, 128  }
  0x32   : > { %431 = vsyncadd (%p348_p8), %s245_s7, 4294967168  ;;  %p14_p9 = scmp.ge.s32.totalorder %s494_s18, 4   ;;  %s566_s12 = smov %s438_s13 }
  0x33   : > { %s567_s13 = smov %s442_s14  ;;  %s568_s14 = smov %s505_s21 }
  0x34   : > { %s569_s15 = smov %s494_s18  ;;  %16 = sbr.rel (!%p14_p9) target bundleno = 3 (0x3), region = 78 }
  0x39   :  { %258 = vsyncpa [#allocation3], 1 }
  0x3a   :  { %260 = vsyncpa [#allocation3 + $0x1], 1 }

</bundles_post_ra>
